<compile_context>
chip_gen: v6e
topology: v6e:2x2x1
jax: 0.10.0
libtpu: 0.0.40
codegen_flags: <defaults>
</compile_context>

<pallas_src>
import jax
import jax.numpy as jnp
from jax.experimental import pallas as pl
from jax.experimental.pallas import tpu as pltpu


# ---------------------------------------------------------------------------
# Kernel bodies
# ---------------------------------------------------------------------------
def _make_decoder_kernel(add_bias: bool):
    """Tiled matmul with f32 accumulation over the K (dict_size) grid axis."""

    def _accumulate(f_ref, w_ref, acc_ref):
        k = pl.program_id(3)
        lhs = f_ref[...]
        if lhs.dtype != w_ref.dtype:            # static (trace-time) check
            lhs = lhs.astype(w_ref.dtype)       # per-tile VPU cast, no HBM cost
        prod = jnp.dot(lhs, w_ref[...], preferred_element_type=jnp.float32)

        @pl.when(k == 0)
        def _():
            acc_ref[...] = prod                 # direct write: no zero-fill + add

        @pl.when(k != 0)
        def _():
            acc_ref[...] += prod

    if add_bias:
        def kernel(f_ref, w_ref, b_ref, o_ref, acc_ref):
            _accumulate(f_ref, w_ref, acc_ref)

            @pl.when(pl.program_id(3) == pl.num_programs(3) - 1)
            def _():
                out = acc_ref[...] + b_ref[...].astype(jnp.float32)  # (1, tn) bcast
                o_ref[...] = out.astype(o_ref.dtype)
    else:
        def kernel(f_ref, w_ref, o_ref, acc_ref):
            _accumulate(f_ref, w_ref, acc_ref)

            @pl.when(pl.program_id(3) == pl.num_programs(3) - 1)
            def _():
                o_ref[...] = acc_ref[...].astype(o_ref.dtype)

    return kernel


# ---------------------------------------------------------------------------
# Tile / VMEM helpers
# ---------------------------------------------------------------------------
def _sublane_granule(dtype) -> int:
    itemsize = jnp.dtype(dtype).itemsize
    if itemsize >= 4:
        return 8
    if itemsize == 2:
        return 16
    return 32


def _pick_tile(dim: int, target: int, granule: int) -> int:
    """Largest tile <= target that evenly divides `dim` and is a multiple of
    `granule`; falls back to the full dim (always a legal block shape)."""
    if dim <= target:
        return dim
    t = (min(target, dim) // granule) * granule
    while t >= granule:
        if dim % t == 0:
            return t
        t -= granule
    # TODO(synk): for awkward dims this full-dim fallback can exceed the VMEM
    # budget; pad the offending dim upstream if this ever triggers.
    return dim


def _vmem_limit_bytes() -> int:
    """Per-chip VMEM limit for this pallas_call (~75% of physical VMEM)."""
    try:
        cap = int(pltpu.get_tpu_info().vmem_capacity_bytes)
    except Exception:
        cap = 64 * 1024 * 1024   # conservative fallback: v7x per-core VMEM
    return max(16 * 1024 * 1024, min(int(0.75 * cap), cap - (8 << 20)))


# ---------------------------------------------------------------------------
# Forward wrapper
# ---------------------------------------------------------------------------
def crosscoder_decoder_forward(f, weight, bias=None, select_features=None,
                               add_bias=True, layer_major_output=False,
                               out_dtype=None,
                               tm_target=None, tk_target=512, tn_target=512,
                               weight_buffers=None):
    """
    JAX/Pallas equivalent of CrossCoderDecoder.forward.

    Args:
        f:      (B, F) or (B, L, F) features.
        weight: (L, F, D) decoder weight.  Persist it in bf16 outside this call
                for the fast path (the wrapper never casts it).
        bias:   (L, D); required when add_bias=True.
        select_features: optional list/array of feature indices (columns of F).
        layer_major_output: if True, return (L, B, D) and skip the relayout.
        tm_target: batch-tile cap; None (default) = as much of B as VMEM allows.
        weight_buffers: optional pipeline depth (e.g. 3) for the streamed weight
                blocks if a profile shows exposed weight DMA.
    Returns:
        (B, L, D) activations (or (L, B, D) if layer_major_output), dtype of f
        unless out_dtype is given.
    """
    if add_bias and bias is None:
        raise ValueError("bias is required when add_bias=True")

    if select_features is not None:
        # TODO(synk): for |sel| comparable to F, replace this HBM gather (writes a
        # second weight-sized array) with a scalar-prefetched row gather
        # (PrefetchScalarGridSpec(num_scalar_prefetch=1) + pl.Element on the F axis).
        sel = jnp.asarray(select_features, dtype=jnp.int32)
        weight = jnp.take(weight, sel, axis=1)

    L, F, D = weight.shape
    B = f.shape[0]
    if out_dtype is None:
        out_dtype = f.dtype
    f_item = jnp.dtype(f.dtype).itemsize
    w_item = jnp.dtype(weight.dtype).itemsize
    o_item = jnp.dtype(out_dtype).itemsize

    # --- per-chip VMEM budget & tile selection ------------------------------
    vmem_limit = _vmem_limit_bytes()
    tile_budget = int(0.85 * vmem_limit)        # headroom for Mosaic temporaries

    tk = _pick_tile(F, tk_target, 128)          # lane (f) / sublane (weight)
    tn = _pick_tile(D, tn_target, 128)          # lane (weight / out / bias)

    # tm: as much of B as fits -- tm == B streams the weight from HBM exactly once.
    # VMEM model: double-buffered f / weight / out tiles + one f32 accumulator.
    fixed_bytes = 2 * tk * tn * w_item + 2 * tn * 4               # weight + bias bufs
    per_row_bytes = 2 * tk * f_item + tn * 4 + 2 * tn * o_item    # f + acc + out
    if tile_budget > fixed_bytes + per_row_bytes:
        rows_cap = (tile_budget - fixed_bytes) // per_row_bytes
    else:
        rows_cap = 1
    tm_cap = B if tm_target is None else min(B, int(tm_target))
    tm_cap = min(tm_cap, int(rows_cap))
    tm_granule = max(_sublane_granule(f.dtype), _sublane_granule(out_dtype))
    tm = B if tm_cap >= B else _pick_tile(B, tm_cap, tm_granule)

    n_i, n_j, n_k = B // tm, D // tn, F // tk
    # Leading "parallel" axes are weight-partitioning dims (L, D-cols) so a 2-TC
    # chip shards the weight stream, not the batch; K is last / "arbitrary".
    grid = (L, n_j, n_i, n_k)

    # --- BlockSpecs ----------------------------------------------------------
    if f.ndim == 2:
        f_arr = f
        f_spec = pl.BlockSpec((tm, tk), lambda l, j, i, k: (i, k))
    else:
        # TODO(synk): produce layer-major (L, B, F) features upstream to drop this
        # extra HBM pass over f on the 3-D path.
        f_arr = jnp.transpose(f, (1, 0, 2))
        f_spec = pl.BlockSpec((None, tm, tk), lambda l, j, i, k: (l, i, k))

    w_kwargs = {}
    if weight_buffers is not None and int(weight_buffers) != 2:
        w_kwargs["pipeline_mode"] = pl.Buffered(int(weight_buffers))
    w_spec = pl.BlockSpec((None, tk, tn), lambda l, j, i, k: (l, k, j), **w_kwargs)
    o_spec = pl.BlockSpec((None, tm, tn), lambda l, j, i, k: (l, i, j))

    in_specs = [f_spec, w_spec]
    inputs = [f_arr, weight]
    if add_bias:
        in_specs.append(pl.BlockSpec((None, 1, tn), lambda l, j, i, k: (l, 0, j)))
        inputs.append(bias.reshape(L, 1, D))

    # --- honest cost estimate ------------------------------------------------
    steps = L * n_j * n_i * n_k
    bytes_accessed = (
        steps * tm * tk * f_item                                   # streamed f tiles
        + steps * tk * tn * w_item                                 # streamed weight tiles
        + (steps * tn * jnp.dtype(bias.dtype).itemsize if add_bias else 0)
        + L * B * D * o_item                                       # output writeback
    )
    cost = pl.CostEstimate(flops=2 * B * L * F * D, transcendentals=0,
                           bytes_accessed=int(bytes_accessed))

    out_lbd = pl.pallas_call(
        _make_decoder_kernel(add_bias),
        out_shape=jax.ShapeDtypeStruct((L, B, D), out_dtype),
        grid_spec=pltpu.PrefetchScalarGridSpec(
            num_scalar_prefetch=0,
            grid=grid,
            in_specs=in_specs,
            out_specs=o_spec,
            scratch_shapes=[pltpu.VMEM((tm, tn), jnp.float32)],
        ),
        compiler_params=pltpu.CompilerParams(
            dimension_semantics=("parallel", "parallel", "parallel", "arbitrary"),
            vmem_limit_bytes=vmem_limit,
        ),
        cost_estimate=cost,
    )(*inputs)

    if layer_major_output:
        return out_lbd
    # TODO(synk): consume the layer-major (L, B, D) layout downstream (or accept a
    # size-1 second-minor output block) to drop this extra B*L*D HBM pass.
    return jnp.transpose(out_lbd, (1, 0, 2))


# ---------------------------------------------------------------------------
# Parameter init mirroring the PyTorch __init__ shapes
# ---------------------------------------------------------------------------
def init_crosscoder_decoder_params(key, activation_dim, dict_size, num_layers,
                                   same_init_for_all_layers=False,
                                   norm_init_scale=None):
    """weight: (L, F, D) kaiming-uniform-like; bias: (L, D) zeros."""
    kw, _ = jax.random.split(key)
    if same_init_for_all_layers:
        bound = jnp.sqrt(6.0 / dict_size)
        w = jax.random.uniform(kw, (dict_size, activation_dim),
                               minval=-bound, maxval=bound, dtype=jnp.float32)
        weight = jnp.broadcast_to(w, (num_layers, dict_size, activation_dim))
    else:
        fan_in = dict_size * activation_dim  # PyTorch rule for 3-D kaiming_uniform_
        bound = jnp.sqrt(6.0 / fan_in)
        weight = jax.random.uniform(kw, (num_layers, dict_size, activation_dim),
                                    minval=-bound, maxval=bound, dtype=jnp.float32)
    if norm_init_scale is not None:
        norms = jnp.linalg.norm(weight, axis=2, keepdims=True)
        weight = weight / norms * norm_init_scale
    bias = jnp.zeros((num_layers, activation_dim), dtype=jnp.float32)
    return weight, bias


if __name__ == "__main__":
    # Small shapes consistent with the module (B, F=dict_size, D=activation_dim, L).
    batch_size = 8
    dict_size = 256       # F
    activation_dim = 256  # D
    num_layers = 3        # L

    key = jax.random.PRNGKey(0)
    k_param, k_f2, k_f3, k_bias = jax.random.split(key, 4)

    weight, bias = init_crosscoder_decoder_params(
        k_param, activation_dim, dict_size, num_layers, norm_init_scale=1.0)
    bias = 0.1 * jax.random.normal(k_bias, bias.shape, dtype=jnp.float32)

    # case 1: f is (B, F), default path (tm == B, weight streamed once)
    f2 = jax.random.normal(k_f2, (batch_size, dict_size), dtype=jnp.float32)
    out2 = jax.block_until_ready(crosscoder_decoder_forward(f2, weight, bias))
    ref2 = jnp.einsum('bf,lfd->bld', f2, weight) + bias
    assert out2.shape == (batch_size, num_layers, activation_dim)
    assert jnp.allclose(out2, ref2, atol=1e-4, rtol=1e-4)

    # case 2: force small tiles so the multi-step K/N accumulator path is exercised
    out2_tiled = jax.block_until_ready(
        crosscoder_decoder_forward(f2, weight, bias,
                                   tm_target=8, tk_target=128, tn_target=128))
    assert jnp.allclose(out2_tiled, ref2, atol=1e-4, rtol=1e-4)

    # case 3: f is (B, L, F)
    f3 = jax.random.normal(k_f3, (batch_size, num_layers, dict_size),
                           dtype=jnp.float32)
    out3 = jax.block_until_ready(crosscoder_decoder_forward(f3, weight, bias))
    ref3 = jnp.einsum('blf,lfd->bld', f3, weight) + bias
    assert out3.shape == (batch_size, num_layers, activation_dim)
    assert jnp.allclose(out3, ref3, atol=1e-4, rtol=1e-4)

    # case 4: select_features + no bias (bias-free kernel, no bias DMA)
    sel = [0, 5, 7, 9, 16, 31, 64, 127]
    f_sel = jax.random.normal(k_f2, (batch_size, len(sel)), dtype=jnp.float32)
    out_sel = jax.block_until_ready(
        crosscoder_decoder_forward(f_sel, weight, bias,
                                   select_features=sel, add_bias=False))
    ref_sel = jnp.einsum('bf,lfd->bld', f_sel, weight[:, jnp.asarray(sel), :])
    assert jnp.allclose(out_sel, ref_sel, atol=1e-4, rtol=1e-4)

    # case 5: persisted bf16 weight (the fast path: no wrapper-side cast, f cast
    # per-tile inside the kernel, f32 accumulation)
    weight_bf16 = weight.astype(jnp.bfloat16)   # persisted once, outside the call
    out_bf16 = jax.block_until_ready(
        crosscoder_decoder_forward(f2, weight_bf16, bias, tk_target=128))
    assert out_bf16.dtype == jnp.float32
    assert jnp.allclose(out_bf16, ref2, atol=5e-2, rtol=5e-2)

    # case 6: layer-major output (skips the final relayout)
    out_lm = jax.block_until_ready(
        crosscoder_decoder_forward(f2, weight, bias, layer_major_output=True))
    assert out_lm.shape == (num_layers, batch_size, activation_dim)
    assert jnp.allclose(jnp.transpose(out_lm, (1, 0, 2)), ref2, atol=1e-4, rtol=1e-4)

    print("KERNEL_OK")
</pallas_src>

<mosaic_0001>
module attributes {stable_mosaic.version = 11 : i64} {
  func.func @kernel(%arg0: i32, %arg1: i32, %arg2: i32, %arg3: i32, %arg4: memref<8x256xf32, #tpu.memory_space<vmem>>, %arg5: memref<1x256x256xf32, #tpu.memory_space<vmem>>, %arg6: memref<1x1x256xf32, #tpu.memory_space<vmem>>, %arg7: memref<1x8x256xf32, #tpu.memory_space<vmem>>, %arg8: memref<8x256xf32, #tpu.memory_space<vmem>>) attributes {dimension_semantics = [#tpu.dimension_semantics<parallel>, #tpu.dimension_semantics<parallel>, #tpu.dimension_semantics<parallel>, #tpu.dimension_semantics<arbitrary>], iteration_bounds = array<i64: 3, 1, 1, 1>, scalar_prefetch = 0 : i64, scratch_operands = 1 : i64, tpu.core_type = #tpu.core_type<tc>, window_params = [{transform_indices = @transform_0, window_bounds = array<i64: 8, 256>}, {transform_indices = @transform_1, window_bounds = array<i64: 1, 256, 256>}, {transform_indices = @transform_2, window_bounds = array<i64: 1, 1, 256>}, {transform_indices = @transform_3, window_bounds = array<i64: 1, 8, 256>}]} {
    %c0 = arith.constant 0 : index
    %c0_0 = arith.constant 0 : index
    %0 = vector.load %arg4[%c0, %c0_0] : memref<8x256xf32, #tpu.memory_space<vmem>>, vector<8x256xf32>
    %c0_1 = arith.constant 0 : index
    %c0_2 = arith.constant 0 : index
    %c0_3 = arith.constant 0 : index
    %1 = vector.load %arg5[%c0_1, %c0_2, %c0_3] : memref<1x256x256xf32, #tpu.memory_space<vmem>>, vector<1x256x256xf32>
    %2 = vector.shape_cast %1 : vector<1x256x256xf32> to vector<256x256xf32>
    %cst = arith.constant dense<0.000000e+00> : vector<8x256xf32>
    %3 = tpu.matmul %0, %2, %cst {dimension_numbers = #tpu.dot_dimension_numbers<[1], [0], [0], [1], [0, 0, 1, 1], [], []>} : vector<8x256xf32>, vector<256x256xf32>, vector<8x256xf32> -> vector<8x256xf32>
    %c0_i32 = arith.constant 0 : i32
    %4 = arith.cmpi eq, %arg3, %c0_i32 : i32
    %5 = arith.extui %4 : i1 to i32
    %c0_i32_4 = arith.constant 0 : i32
    %6 = arith.cmpi ne, %5, %c0_i32_4 : i32
    scf.if %6 {
      %c0_9 = arith.constant 0 : index
      %c0_10 = arith.constant 0 : index
      %13 = vector.load %arg8[%c0_9, %c0_10] : memref<8x256xf32, #tpu.memory_space<vmem>>, vector<8x256xf32>
      tpu.vector_store %arg8[%c0_9, %c0_10], %3 {strides = array<i32>} : memref<8x256xf32, #tpu.memory_space<vmem>>, vector<8x256xf32>,
    } else {
    }
    %c0_i32_5 = arith.constant 0 : i32
    %7 = arith.cmpi ne, %arg3, %c0_i32_5 : i32
    %8 = arith.extui %7 : i1 to i32
    %c0_i32_6 = arith.constant 0 : i32
    %9 = arith.cmpi ne, %8, %c0_i32_6 : i32
    scf.if %9 {
      %c0_9 = arith.constant 0 : index
      %c0_10 = arith.constant 0 : index
      %13 = vector.load %arg8[%c0_9, %c0_10] : memref<8x256xf32, #tpu.memory_space<vmem>>, vector<8x256xf32>
      %14 = arith.addf %13, %3 : vector<8x256xf32>
      %c0_11 = arith.constant 0 : index
      %c0_12 = arith.constant 0 : index
      %15 = vector.load %arg8[%c0_11, %c0_12] : memref<8x256xf32, #tpu.memory_space<vmem>>, vector<8x256xf32>
      tpu.vector_store %arg8[%c0_11, %c0_12], %14 {strides = array<i32>} : memref<8x256xf32, #tpu.memory_space<vmem>>, vector<8x256xf32>,
    } else {
    }
    %c0_i32_7 = arith.constant 0 : i32
    %10 = arith.cmpi eq, %arg3, %c0_i32_7 : i32
    %11 = arith.extui %10 : i1 to i32
    %c0_i32_8 = arith.constant 0 : i32
    %12 = arith.cmpi ne, %11, %c0_i32_8 : i32
    scf.if %12 {
      %c0_9 = arith.constant 0 : index
      %c0_10 = arith.constant 0 : index
      %13 = vector.load %arg8[%c0_9, %c0_10] : memref<8x256xf32, #tpu.memory_space<vmem>>, vector<8x256xf32>
      %c0_11 = arith.constant 0 : index
      %c0_12 = arith.constant 0 : index
      %c0_13 = arith.constant 0 : index
      %14 = vector.load %arg6[%c0_11, %c0_12, %c0_13] : memref<1x1x256xf32, #tpu.memory_space<vmem>>, vector<1x1x256xf32>
      %15 = vector.shape_cast %14 : vector<1x1x256xf32> to vector<1x256xf32>
      %16 = vector.broadcast %15 : vector<1x256xf32> to vector<8x256xf32>
      %17 = arith.addf %13, %16 : vector<8x256xf32>
      %c0_14 = arith.constant 0 : index
      %c0_15 = arith.constant 0 : index
      %c0_16 = arith.constant 0 : index
      %18 = vector.load %arg7[%c0_14, %c0_15, %c0_16] : memref<1x8x256xf32, #tpu.memory_space<vmem>>, vector<1x8x256xf32>
      %19 = vector.shape_cast %18 : vector<1x8x256xf32> to vector<8x256xf32>
      %20 = vector.shape_cast %17 : vector<8x256xf32> to vector<1x8x256xf32>
      tpu.vector_store %arg7[%c0_14, %c0_15, %c0_16], %20 {strides = array<i32>} : memref<1x8x256xf32, #tpu.memory_space<vmem>>, vector<1x8x256xf32>,
    } else {
    }
    return
  }
  func.func @transform_0(%arg0: i32, %arg1: i32, %arg2: i32, %arg3: i32) -> (i32, i32) {
    %c0_i32 = arith.constant 0 : i32
    return %arg2, %arg3 : i32, i32
  }
  func.func @transform_1(%arg0: i32, %arg1: i32, %arg2: i32, %arg3: i32) -> (i32, i32, i32) {
    %c0_i32 = arith.constant 0 : i32
    return %arg0, %arg3, %arg1 : i32, i32, i32
  }
  func.func @transform_2(%arg0: i32, %arg1: i32, %arg2: i32, %arg3: i32) -> (i32, i32, i32) {
    %c0_i32 = arith.constant 0 : i32
    %c0_i32_0 = arith.constant 0 : i32
    return %arg0, %c0_i32, %arg1 : i32, i32, i32
  }
  func.func @transform_3(%arg0: i32, %arg1: i32, %arg2: i32, %arg3: i32) -> (i32, i32, i32) {
    %c0_i32 = arith.constant 0 : i32
    return %arg0, %arg2, %arg1 : i32, i32, i32
  }
}

</mosaic_0001>

<bundles_post_ra>
// kernel: tpu_custom_call.1
= control target key start
LH: loop header
LB: loop body
LE: loop exit
PB: predicated region body
PF: predicated region fallthrough
CT: control target
= control target key end

     0   :  { %8 = vsyncpa [#allocation4], 0  ;;  %s1162_s0 = inlined_call_operand.hbm [shape: f32[8,256], index: 0, kind: input, shape index: {}]   ;;  %s1163_s1 = inlined_call_operand.hbm [shape: f32[3,256,256], index: 1, kind: input, shape index: {}]   ;;  %s1164_s2 = inlined_call_operand.hbm [shape: f32[3,1,256], index: 2, kind: input, shape index: {}]   ;;  %s1165_s3 = inlined_call_operand.hbm [shape: f32[3,8,256], index: 3, kind: output, shape index: {}]  }
   0x1   :  { %9 = vsyncpa [#allocation7], 0 }
   0x2   :  { %11 = vsyncpa [#allocation7 + $0x1], 0 }
   0x3   :  { %12 = vsyncpa [#allocation5], 0 }
   0x4   :  { %14 = vsyncpa [#allocation5 + $0x1], 0  ;;  %s922_s12 = smov 0   ;;  %s924_s13 = smov 0  }
   0x5   :  { %s926_s14 = smov 0   ;;  %s928_s15 = smov 0  }
   0x6   :  { %s930_s16 = smov 0   ;;  %s932_s17 = smov 0  }
   0x7 LB: > { %s46_s18 = sadd.s32 1, %s890_s16  ;;  %s85_s19 = sadd.s32 1, %s882_s14  ;;  %s894_s17 = sphi %s932_s17, %s20_s17   ;;  %s890_s16 = sphi %s930_s16, %s1187_s16   ;;  %s886_s15 = sphi %s928_s15, %s1186_s15   ;;  %s882_s14 = sphi %s926_s14, %s1185_s14   ;;  %s878_s13 = sphi %s924_s13, %s1184_s13   ;;  %s874_s12 = sphi %s922_s12, %s1183_s12  }
   0x8   : > { %p48_p0 = scmp.ge.s32.totalorder %s46_s18, 3  ;;  %p92_p1 = scmp.ne.s32.totalorder %s882_s14, %s878_s13 }
   0x9   : > { %p93_p2 = scmp.eq.s32.totalorder %s894_s17, 0  ;;  %p674_p4 = scmp.lt.s32.totalorder %s894_s17, 3 }
   0xa   : > { %s1189_s18 = smov (%p48_p0, %s46_s18), 0  ;;  %s196_s21 = sand.u32 1, %s894_s17  }
   0xb   : > { %p94_p3 = por %p93_p2, %p92_p1  ;;  %s78_s20 = ssub.s32 %s890_s16, %s1189_s18 }
   0xc   : > { %p83_p5 = scmp.eq.s32.totalorder %s78_s20, 0  ;;  %s198_s22 = sand.u32 1, %s882_s14  }
   0xd   : > { %s645_s23 = sshll.u32 %s890_s16, 13  ;;  %s629_s25 = sshll.u32 %s198_s22, 9 }
   0xe   : > { %s969_s24 = scalar_select %p83_p5, %s882_s14, %s85_s19  }
   0xf   : > { %s211_s28 = scalar_lea.hbm %s1163_s1, %s645_s23  ;;  %p976_p6 = pnand %p674_p4, %p94_p3 }
  0x10   : > { %s200_s30 = scalar_lea.vmem [#allocation6], %s629_s25  ;;  %s980_s5 = scalar_lea.sflag [#allocation7], %s196_s21 }
  0x11   : > { %s212_s4 = sshll.u32 %s200_s30, 4  ;;  %p1166_p7 = pneg %p976_p6  ;;  %s213_s4 = int_to_ptr.vmem [resolvable:$true] %s212_s4 }
  0x12   : > { %s741_s6 = scalar_lea.vmem %s213_s4, 8192  ;;  %s896_s7 = smov [#allocation6]  }
  0x13   : > { %p742_p8 = scmp.ne.s32.totalorder %s213_s4, %s741_s6  ;;  %s746_s8 = sshll.u32 %s896_s7, 4  ;;  %s747_s8 = int_to_ptr.vmem [resolvable:$false] %s746_s8 }
  0x14   : > { %s748_s9 = scalar_lea.vmem %s747_s8, 16384  ;;  %p749_p11 = scmp.lt.s32.totalorder %s213_s4, %s747_s8 }
  0x15   : > { %p744_p9 = pnand %p742_p8, %p1166_p7  ;;  %p750_p12 = scmp.lt.s32.totalorder %s748_s9, %s741_s6 }
  0x17   : > { %p745_p10 = pneg %p744_p9  ;;  %p751_p13 = por %p750_p12, %p749_p11 }
  0x19   : > { %p752_p0 = pnand %p751_p13, %p745_p10 }
  0x1b   : > { %755 = shalt.err (!%p752_p0)
}
  0x1c   : > { %s897_s10 = smov 256   ;;  %s898_s11 = smov 16  }
  0x1d   : > { %665 = dma.hbm_to_vmem [thread:$0]  (!%p976_p6), %s211_s28, 8192, %s213_s4, %s980_s5, %s897_s10, %s897_s10, %s898_s11  }
  0x1e   : > { %s991_s19 = sadd.s32 4294967295, %s894_s17   ;;  %s625_s20 = sadd.s32 4294967294, %s894_s17  }
  0x1f   : > { %p98_p2 = scmp.ne.s32.totalorder %s878_s13, %s874_s12  ;;  %p1168_p3 = scmp.eq.s32.totalorder %s991_s19, 0 }
  0x20   : > { %p154_p4 = scmp.eq.s32.totalorder %s991_s19, 2  ;;  %p160_p5 = scmp.eq.s32.totalorder %s625_s20, 2 }
  0x21   : > { %p626_p8 = scmp.ge.s32.totalorder %s894_s17, 1  ;;  %p1001_p9 = por %p1168_p3, %p98_p2 }
  0x22   : > { %p1008_p10 = por %p154_p4, %p92_p1  ;;  %p1012_p11 = por %p160_p5, %p98_p2 }
  0x23   : > { %s1172_s21 = scalar_select %p1001_p9, 1, 0 }
  0x24   : > { %s1173_s23 = scalar_select %p1008_p10, 1, 0 }
  0x25   : > { %s1174_s25 = scalar_select %p1012_p11, 1, 0 }
  0x26   : > { %p167_p12 = scmp.lt.s32.totalorder %s894_s17, 4  ;;  %s899_s27 = smov [#allocation3]  }
  0x27   : > { %s185_s28 = sshll.u32 %s899_s27, 4  ;;  %s632_s30 = sshll.u32 %s198_s22, 1  ;;  %s186_s28 = int_to_ptr.vmem [resolvable:$true] %s185_s28 }
  0x28   : > { %p1017_p13 = pnand %p626_p8, %p167_p12  ;;  %s646_s4 = sshll.u32 %s890_s16, 5 }
  0x29   : > { %s226_s6 = scalar_lea.vmem [#allocation8], %s632_s30  ;;  %s234_s10 = scalar_lea.hbm %s1164_s2, %s646_s4 }
  0x2a   : > { %s1175_s26 = scalar_select %p1017_p13, 1, 0 }
  0x2b   : > { %p658_p0 = pneg %p1017_p13  ;;  %s236_s7 = sshll.u32 %s226_s6, 4  ;;  %s237_s7 = int_to_ptr.vmem [resolvable:$true] %s236_s7 }
  0x2c   : > { %s767_s11 = scalar_lea.vmem %s186_s28, 256  ;;  %p775_p12 = scmp.lt.s32.totalorder %s186_s28, %s186_s28 }
  0x2d   : > { %p659_p1 = pnand %p658_p0, %p1168_p3  ;;  %p768_p4 = scmp.ne.s32.totalorder %s186_s28, %s767_s11 }
  0x2e   : > { %p776_p7 = scmp.lt.s32.totalorder %s767_s11, %s767_s11 }
  0x2f   : > { %p758_p2 = pneg %p659_p1 }
  0x30   : > { %p777_p11 = por %p776_p7, %p775_p12 }
  0x31   : > { %p770_p5 = pnand %p768_p4, %p758_p2 }
  0x33   : > { %p771_p8 = pneg %p770_p5 }
  0x35   : > { %p778_p10 = pnand %p777_p11, %p771_p8 }
  0x37   : > { %781 = shalt.err (!%p778_p10)
}
  0x38   : > { %661 = dma.hbm_to_vmem [thread:$0]  (!%p659_p1), %s1162_s0, 256, %s186_s28, [#allocation4]  }
  0x39   : > { %s795_s27 = scalar_lea.vmem %s237_s7, 32  ;;  %p1176_p3 = pneg %p976_p6 }
  0x3a   : > { %p796_p0 = scmp.ne.s32.totalorder %s237_s7, %s795_s27  ;;  %s900_s30 = smov [#allocation8]  }
  0x3b   : > { %s800_s4 = sshll.u32 %s900_s30, 4  ;;  %s801_s4 = int_to_ptr.vmem [resolvable:$false] %s800_s4 }
  0x3c   : > { %p798_p9 = pnand %p796_p0, %p1176_p3  ;;  %s802_s6 = scalar_lea.vmem %s801_s4, 64 }
  0x3d   : > { %p803_p2 = scmp.lt.s32.totalorder %s237_s7, %s801_s4  ;;  %p804_p4 = scmp.lt.s32.totalorder %s802_s6, %s795_s27 }
  0x3e   : > { %p799_p13 = pneg %p798_p9 }
  0x3f   : > { %p805_p7 = por %p804_p4, %p803_p2 }
  0x41   : > { %p806_p11 = pnand %p805_p7, %p799_p13 }
  0x43   : > { %809 = shalt.err (!%p806_p11)
}
  0x44   : > { %668 = dma.hbm_to_vmem [thread:$0]  (!%p976_p6), %s234_s10, 32, %s237_s7, %s980_s5  }
  0x45   : > { %p1177_p10 = scmp.ne.s32.totalorder %s1175_s26, 0 }
  0x46   : > { %p1178_p1 = scmp.eq.s32.totalorder (!%p1177_p10), %s991_s19, 0 }
  0x47   : > { %245 = sbr.rel (%p1177_p10) target bundleno = 357 (0x165), region = 32 }
  0x4c   : > { %861 = dma.done.wait (%p1178_p1), [#allocation4], 256   ;;  %p1179_p3 = pmov %p1178_p1 }
  0x4d   : > { %s251_s28 = sand.u32 1, %s991_s19   ;;  %s1048_s8 = sand.u32 1, %s878_s13  }
  0x4e   : > { %863 = vsyncadd (%p1179_p3), [#allocation4], 4294967040  ;;  %s637_s9 = sshll.u32 %s1048_s8, 9  ;;  %s252_s29 = scalar_lea.sflag [#allocation7], %s251_s28 }
  0x4f   : > { %s1051_s11 = scalar_lea.vmem [#allocation6], %s637_s9  ;;  %p1180_p6 = scmp.ne.s32.totalorder %s1172_s21, 0 }
  0x51   : > { %865 = dma.done.wait (%p1180_p6), %s252_s29, 8224  }
  0x52   : > { %867 = vsyncadd (%p1180_p6), %s252_s29, 4294959072  ;;  %v330_v0 = vld [vmem:[%s1051_s11 + $0xf8] sm:$0xff]  ;;  %v329_v1 = vld [vmem:[%s1051_s11 + $0xf0] sm:$0xff]  ;;  %s638_s5 = sshll.u32 %s1048_s8, 1  ;;  %s639_s19 = sshll.u32 %s1048_s8, 4 }
  0x53   : > { %v328_v2 = vld [vmem:[%s1051_s11 + $0xe8] sm:$0xff]  ;;  %363 = vmatprep.subr.mxu0 %v330_v0  ;;  %v327_v3 = vld [vmem:[%s1051_s11 + $0xe0] sm:$0xff]  ;;  %v326_v4 = vld [vmem:[%s1051_s11 + $0xd8] sm:$0xff]  ;;  %s264_s21 = scalar_lea.vmem [#allocation8], %s638_s5  ;;  %s647_s26 = sshll.u32 %s886_s15, 8 }
  0x54   : > { %364 = vmatpush1.msra.mxu0 %v329_v1  ;;  %v325_v5 = vld [vmem:[%s1051_s11 + $0xd0] sm:$0xff]  ;;  %v324_v6 = vld [vmem:[%s1051_s11 + $0xc8] sm:$0xff]  ;;  %v323_v7 = vld [vmem:[%s1051_s11 + $0xc0] sm:$0xff]  ;;  %s291_s7 = scalar_lea.vmem [#allocation9], %s639_s19  ;;  %s488_s27 = scalar_lea.hbm %s1165_s3, %s647_s26 }
  0x55   : > { %365 = vmatprep.subr.mxu0 %v328_v2  ;;  %v322_v8 = vld [vmem:[%s1051_s11 + $0xb8] sm:$0xff]  ;;  %v321_v9 = vld [vmem:[%s1051_s11 + $0xb0] sm:$0xff]  ;;  %v320_v10 = vld [vmem:[%s1051_s11 + $0xa8] sm:$0xff]  ;;  %v457_v2 = vlaneseq  ;;  %s490_s10 = sshll.u32 %s291_s7, 4  ;;  %s472_s30 = scalar_lea.sflag [#allocation5], %s1048_s8  ;;  %s491_s10 = int_to_ptr.vmem [resolvable:$true] %s490_s10 }
  0x56   : > { %366 = vmatpush1.msra.mxu0 %v327_v3  ;;  %v319_v11 = vld [vmem:[%s1051_s11 + $0xa0] sm:$0xff]  ;;  %v318_v12 = vld [vmem:[%s1051_s11 + $0x98] sm:$0xff]  ;;  %v317_v13 = vld [vmem:[%s1051_s11 + $0x90] sm:$0xff]  ;;  %s810_s4 = scalar_lea.vmem %s491_s10, 256  ;;  %p1181_p13 = scmp.ne.s32.totalorder %s1173_s23, 0 }
  0x57   : > { %367 = vmatprep.subr.mxu0 %v326_v4  ;;  %v316_v14 = vld [vmem:[%s1051_s11 + $0x88] sm:$0xff]  ;;  %v315_v15 = vld [vmem:[%s1051_s11 + $0x80] sm:$0xff]  ;;  %v314_v16 = vld [vmem:[%s1051_s11 + $0x78] sm:$0xff]  ;;  %v458_v3 = vshrl.u32 %v457_v2, 7  ;;  %p811_p9 = scmp.ne.s32.totalorder %s491_s10, %s810_s4  ;;  %s901_s6 = smov [#allocation9]  }
  0x58   : > { %368 = vmatpush1.msra.mxu0 %v325_v5  ;;  %v313_v17 = vld [vmem:[%s1051_s11 + $0x70] sm:$0xff]  ;;  %v312_v18 = vld [vmem:[%s1051_s11 + $0x68] sm:$0xff]  ;;  %v311_v19 = vld [vmem:[%s1051_s11 + $0x60] sm:$0xff]  ;;  %s814_s15 = sshll.u32 %s901_s6, 4  ;;  %s815_s15 = int_to_ptr.vmem [resolvable:$false] %s814_s15 }
  0x59   : > { %369 = vmatprep.subr.mxu0 %v324_v6  ;;  %v310_v20 = vld [vmem:[%s1051_s11 + $0x58] sm:$0xff]  ;;  %v309_v21 = vld [vmem:[%s1051_s11 + $0x50] sm:$0xff]  ;;  %v308_v22 = vld [vmem:[%s1051_s11 + $0x48] sm:$0xff]  ;;  %v459_v4 = vsub.s32 0, %v458_v3  ;;  %v463_v6 = vsub.s32 1, %v458_v3  ;;  %p812_p5 = pnand %p811_p9, %p1181_p13  ;;  %s816_s28 = scalar_lea.vmem %s815_s15, 512 }
  0x5a   : > { %370 = vmatpush1.msra.mxu0 %v323_v7  ;;  %v307_v23 = vld [vmem:[%s1051_s11 + $0x40] sm:$0xff]  ;;  %v298_v24 = vld [vmem:[#allocation3 + $0x8] sm:$0xff]  ;;  %v305_v26 = vld [vmem:[%s1051_s11 + $0x30] sm:$0xff]  ;;  %p817_p12 = scmp.lt.s32.totalorder %s491_s10, %s815_s15  ;;  %p818_p0 = scmp.lt.s32.totalorder %s816_s28, %s810_s4 }
  0x5b   : > { %371 = vmatprep.subr.mxu0 %v322_v8  ;;  %v306_v25 = vld [vmem:[%s1051_s11 + $0x38] sm:$0xff]  ;;  %427 = vmatprep.mubr.f32.mxu0 %v298_v24  ;;  %v304_v27 = vld [vmem:[%s1051_s11 + $0x28] sm:$0xff]  ;;  %v303_v28 = vld [vmem:[%s1051_s11 + $0x20] sm:$0xff]  ;;  %p813_p8 = pneg %p812_p5 }
  0x5c   : > { %372 = vmatpush1.msra.mxu0 %v321_v9  ;;  %v302_v29 = vld [vmem:[%s1051_s11 + $0x18] sm:$0xff]  ;;  %v301_v30 = vld [vmem:[%s1051_s11 + $0x10] sm:$0xff]  ;;  %v300_v31 = vld [vmem:[%s1051_s11 + $0x8] sm:$0xff]  ;;  %p819_p2 = por %p818_p0, %p817_p12 }
  0x5d   : > { %373 = vmatprep.subr.mxu0 %v320_v10  ;;  %v299_v32 = vld [vmem:[%s1051_s11] sm:$0xff]  ;;  %v362_v33 = vld [vmem:[%s1051_s11 + $0x1f8] sm:$0xff]  ;;  %v361_v34 = vld [vmem:[%s1051_s11 + $0x1f0] sm:$0xff] }
  0x5e   : > { %374 = vmatpush1.msra.mxu0 %v319_v11  ;;  %v360_v35 = vld [vmem:[%s1051_s11 + $0x1e8] sm:$0xff]  ;;  %v359_v36 = vld [vmem:[%s1051_s11 + $0x1e0] sm:$0xff]  ;;  %v358_v37 = vld [vmem:[%s1051_s11 + $0x1d8] sm:$0xff]  ;;  %p820_p4 = pnand %p819_p2, %p813_p8 }
  0x5f   : > { %375 = vmatprep.subr.mxu0 %v318_v12  ;;  %v357_v38 = vld [vmem:[%s1051_s11 + $0x1d0] sm:$0xff]  ;;  %v356_v39 = vld [vmem:[%s1051_s11 + $0x1c8] sm:$0xff]  ;;  %v355_v40 = vld [vmem:[%s1051_s11 + $0x1c0] sm:$0xff] }
  0x60   : > { %376 = vmatpush1.msra.mxu0 %v317_v13  ;;  %v354_v41 = vld [vmem:[%s1051_s11 + $0x1b8] sm:$0xff]  ;;  %v353_v42 = vld [vmem:[%s1051_s11 + $0x1b0] sm:$0xff]  ;;  %v352_v43 = vld [vmem:[%s1051_s11 + $0x1a8] sm:$0xff] }
  0x61   : > { %377 = vmatprep.subr.mxu0 %v316_v14  ;;  %v351_v44 = vld [vmem:[%s1051_s11 + $0x1a0] sm:$0xff]  ;;  %v350_v45 = vld [vmem:[%s1051_s11 + $0x198] sm:$0xff]  ;;  %v349_v46 = vld [vmem:[%s1051_s11 + $0x190] sm:$0xff] }
  0x62   : > { %378 = vmatpush1.msra.mxu0 %v315_v15  ;;  %v348_v47 = vld [vmem:[%s1051_s11 + $0x188] sm:$0xff]  ;;  %v347_v48 = vld [vmem:[%s1051_s11 + $0x180] sm:$0xff]  ;;  %v346_v49 = vld [vmem:[%s1051_s11 + $0x178] sm:$0xff] }
  0x63   : > { %379 = vmatprep.subr.mxu0 %v314_v16  ;;  %v345_v50 = vld [vmem:[%s1051_s11 + $0x170] sm:$0xff]  ;;  %v344_v51 = vld [vmem:[%s1051_s11 + $0x168] sm:$0xff]  ;;  %v343_v52 = vld [vmem:[%s1051_s11 + $0x160] sm:$0xff] }
  0x64   : > { %380 = vmatpush1.msra.mxu0 %v313_v17  ;;  %v342_v53 = vld [vmem:[%s1051_s11 + $0x158] sm:$0xff]  ;;  %v341_v54 = vld [vmem:[%s1051_s11 + $0x150] sm:$0xff]  ;;  %v340_v55 = vld [vmem:[%s1051_s11 + $0x148] sm:$0xff] }
  0x65   : > { %381 = vmatprep.subr.mxu0 %v312_v18  ;;  %v339_v56 = vld [vmem:[%s1051_s11 + $0x140] sm:$0xff]  ;;  %v338_v57 = vld [vmem:[%s1051_s11 + $0x138] sm:$0xff]  ;;  %v337_v58 = vld [vmem:[%s1051_s11 + $0x130] sm:$0xff] }
  0x66   : > { %382 = vmatpush1.msra.mxu0 %v311_v19  ;;  %v336_v59 = vld [vmem:[%s1051_s11 + $0x128] sm:$0xff]  ;;  %v335_v60 = vld [vmem:[%s1051_s11 + $0x120] sm:$0xff]  ;;  %v334_v61 = vld [vmem:[%s1051_s11 + $0x118] sm:$0xff] }
  0x67   : > { %383 = vmatprep.subr.mxu0 %v310_v20  ;;  %v333_v62 = vld [vmem:[%s1051_s11 + $0x110] sm:$0xff]  ;;  %v332_v63 = vld [vmem:[%s1051_s11 + $0x108] sm:$0xff]  ;;  %v331_v0 = vld [vmem:[%s1051_s11 + $0x100] sm:$0xff] }
  0x68   : > { %384 = vmatpush1.msra.mxu0 %v309_v21  ;;  %v297_v1 = vld [vmem:[#allocation3] sm:$0xff]  ;;  %v455_v5 = vld [vmem:[%s264_s21] sm:$0x3] }
  0x69   : > { %385 = vmatprep.subr.mxu0 %v308_v22  ;;  %v460_v7 = vrot.slane %v455_v5, %v459_v4  ;;  %v464_v8 = vrot.slane %v455_v5, %v463_v6 }
  0x6a   : > { %386 = vmatpush1.msra.mxu0 %v307_v23 }
  0x6b   : > { %387 = vmatprep.subr.mxu0 %v306_v25 }
  0x6c   : > { %388 = vmatpush1.msra.mxu0 %v305_v26 }
  0x6d   : > { %389 = vmatprep.subr.mxu0 %v304_v27 }
  0x6e   : > { %390 = vmatpush1.msra.mxu0 %v303_v28 }
  0x6f   : > { %391 = vmatprep.subr.mxu0 %v302_v29 }
  0x70   : > { %392 = vmatpush1.msra.mxu0 %v301_v30 }
  0x71   : > { %393 = vmatprep.subr.mxu0 %v300_v31 }
  0x72   : > { %394 = vmatpush1.msra.mxu0 %v299_v32 }
  0x73   : > { %395 = vmatprep.subr.mxu0 %v362_v33 }
  0x74   : > { %396 = vmatpush2.msra.mxu0 %v361_v34 }
  0x75   : > { %397 = vmatprep.subr.mxu0 %v360_v35 }
  0x76   : > { %398 = vmatpush2.msra.mxu0 %v359_v36 }
  0x77   : > { %399 = vmatprep.subr.mxu0 %v358_v37 }
  0x78   : > { %400 = vmatpush2.msra.mxu0 %v357_v38 }
  0x79   : > { %401 = vmatprep.subr.mxu0 %v356_v39 }
  0x7a   : > { %402 = vmatpush2.msra.mxu0 %v355_v40 }
  0x7b   : > { %403 = vmatprep.subr.mxu0 %v354_v41 }
  0x7c   : > { %404 = vmatpush2.msra.mxu0 %v353_v42 }
  0x7d   : > { %405 = vmatprep.subr.mxu0 %v352_v43 }
  0x7e   : > { %406 = vmatpush2.msra.mxu0 %v351_v44 }
  0x7f   : > { %407 = vmatprep.subr.mxu0 %v350_v45 }
  0x80   : > { %408 = vmatpush2.msra.mxu0 %v349_v46 }
  0x81   : > { %409 = vmatprep.subr.mxu0 %v348_v47 }
  0x82   : > { %410 = vmatpush2.msra.mxu0 %v347_v48 }
  0x83   : > { %411 = vmatprep.subr.mxu0 %v346_v49 }
  0x84   : > { %412 = vmatpush2.msra.mxu0 %v345_v50 }
  0x85   : > { %413 = vmatprep.subr.mxu0 %v344_v51 }
  0x86   : > { %414 = vmatpush2.msra.mxu0 %v343_v52 }
  0x87   : > { %415 = vmatprep.subr.mxu0 %v342_v53 }
  0x88   : > { %416 = vmatpush2.msra.mxu0 %v341_v54 }
  0x89   : > { %417 = vmatprep.subr.mxu0 %v340_v55 }
  0x8a   : > { %418 = vmatpush2.msra.mxu0 %v339_v56 }
  0x8b   : > { %419 = vmatprep.subr.mxu0 %v338_v57 }
  0x8c   : > { %420 = vmatpush2.msra.mxu0 %v337_v58 }
  0x8d   : > { %421 = vmatprep.subr.mxu0 %v336_v59 }
  0x8e   : > { %422 = vmatpush2.msra.mxu0 %v335_v60 }
  0x8f   : > { %423 = vmatprep.subr.mxu0 %v334_v61 }
  0x90   : > { %424 = vmatpush2.msra.mxu0 %v333_v62 }
  0x91   : > { %425 = vmatprep.subr.mxu0 %v332_v63 }
  0x92   : > { %426 = vmatpush2.msra.mxu0 %v331_v0 }
  0x93   : > { %428 = vmatmul.mubr.f32.vlgmr.msra.gmra.mxu0 %v297_v1 }
 0x153   : > { %v429_v9 = vpop.f32.mrf.mxu0 }
 0x154   : > { %v467_v10 = vadd.f32 %v460_v7, %v429_v9 }
 0x155   : > { %v431_v11 = vpop.f32.mrf.mxu0 }
 0x156   : > { %469 = vst [vmem:[%s291_s7] sm:$0xff] %v467_v10  ;;  %v468_v12 = vadd.f32 %v464_v8, %v431_v11 }
 0x158   : > { %470 = vst [vmem:[%s291_s7 + $0x8] sm:$0xff] %v468_v12 }
 0x159   : > { %823 = shalt.err (!%p820_p4)
}
 0x15a   : > { %s824_s9 = scalar_lea.hbm %s488_s27, 256  ;;  %s828_s11 = scalar_lea.hbm %s1165_s3, 768 }
 0x15b   : > { %p825_p7 = scmp.ne.s32.totalorder %s488_s27, %s824_s9  ;;  %p829_p1 = scmp.lt.s32.totalorder %s488_s27, %s1165_s3 }
 0x15c   : > { %p830_p3 = scmp.lt.s32.totalorder %s828_s11, %s824_s9 }
 0x15d   : > { %p826_p11 = pnand %p825_p7, %p1181_p13 }
 0x15e   : > { %p831_p6 = por %p830_p3, %p829_p1 }
 0x15f   : > { %p827_p10 = pneg %p826_p11 }
 0x161   : > { %p832_p9 = pnand %p831_p6, %p827_p10 }
 0x163   : > { %835 = shalt.err (!%p832_p9)
}
 0x164   : > { %656 = dma.vmem_to_hbm [thread:$0]  (%p1181_p13), %s491_s10, 256, %s488_s27, %s472_s30  }
 0x165 PF: > { %p676_p5 = scmp.ge.s32.totalorder %s894_s17, 2  ;;  %s502_s21 = sand.u32 1, %s874_s12  }
 0x166   : > { %p1182_p8 = scmp.ne.s32.totalorder %s1174_s25, 0  ;;  %s503_s26 = scalar_lea.sflag [#allocation5], %s502_s21 }
 0x168   : > { %p670_p12 = pnand %p676_p5, %p1182_p8 }
 0x16a   : > { %p671_p0 = pneg %p670_p12 }
 0x16c   : > { %869 = dma.done.wait (%p671_p0), %s503_s26, 256  }
 0x16d   : > { %871 = vsyncadd (%p671_p0), %s503_s26, 4294967040  ;;  %s20_s17 = sadd.s32 1, %s894_s17   ;;  %s1183_s12 = smov %s878_s13 }
 0x16e   : > { %p17_p2 = scmp.ge.s32.totalorder %s20_s17, 5   ;;  %s1184_s13 = smov %s882_s14 }
 0x16f   : > { %s1185_s14 = smov %s969_s24  ;;  %s1186_s15 = smov %s890_s16 }
 0x170   : > { %s1187_s16 = smov %s1189_s18  ;;  %19 = sbr.rel (!%p17_p2) target bundleno = 7 (0x7), region = 106 }
 0x175   :  { %508 = vsyncpa [#allocation4], 1 }
 0x176   :  { %510 = vsyncpa [#allocation4 + $0x1], 1 }
 0x177   :  { %511 = vsyncpa [#allocation7], 1 }
 0x178   :  { %513 = vsyncpa [#allocation7 + $0x1], 1 }
 0x179   :  { %514 = vsyncpa [#allocation5], 1 }
 0x17a   :  { %516 = vsyncpa [#allocation5 + $0x1], 1 }

</bundles_post_ra>
